<compile_context>
chip_gen: v5e
topology: v5e:2x2
jax: 0.10.0
libtpu: 0.0.40
codegen_flags: <defaults>
</compile_context>

<pallas_src>
import jax
import jax.numpy as jnp
from jax.experimental import pallas as pl
from jax.experimental.pallas import tpu as pltpu


def _structural_descriptor_kernel(nrm_ref, crn_ref, wc_ref, wr_ref, bc_ref, br_ref,
                                  out_ref):
    # nrm_ref: (nb, 3, l_tile)   VMEM
    # crn_ref: (nb, 9, l_tile)   VMEM
    # wc_ref:  (64, 3)           VMEM   correlation conv weight
    # wr_ref:  (64, 9)           VMEM   rotation conv weight
    # bc_ref:  (64, 1)           VMEM
    # br_ref:  (64, 1)           VMEM
    # out_ref: (nb, 128, l_tile) VMEM
    nb = out_ref.shape[0]
    for i in range(nb):  # nb is a small static constant -> unrolled
        yc = jnp.dot(wc_ref[...], nrm_ref[i], preferred_element_type=jnp.float32)
        yr = jnp.dot(wr_ref[...], crn_ref[i], preferred_element_type=jnp.float32)
        # Two sublane-aligned (64-row), lane-dense stores (both unmasked).
        out_ref[i, :64, :] = jnp.maximum(yc + bc_ref[...], 0.0).astype(out_ref.dtype)
        out_ref[i, 64:, :] = jnp.maximum(yr + br_ref[...], 0.0).astype(out_ref.dtype)


def _choose_blocking(N, L, out_itemsize, max_l_tile):
    """Pick (nb, l_tile): large lane-dense L tiles, batch-block when L is small,
    and make sure the grid has enough steps for megacore (v7x: 2 TCs)."""
    # Lane tile: full L if it fits, else the (128-multiple) cap; ragged tail is masked.
    l_tile = L if L <= max_l_tile else max_l_tile

    # Batch-block when L is small so per-step output DMAs stay large and lane-dense.
    nb = 1
    if L <= 2048 and N > 1:
        per_batch_out = 128 * l_tile * out_itemsize
        nb = max(1, min(N, (8 << 20) // max(per_batch_out, 1)))

    def n_steps(nb_, lt_):
        return pl.cdiv(N, nb_) * pl.cdiv(L, lt_)

    # Guarantee >= 4 grid steps when we can do so cheaply (keeps both v7x TCs busy).
    while n_steps(nb, l_tile) < 4:
        if nb > 1:
            nb = max(1, nb // 2)
        elif l_tile > 1024:
            half = max(128, (l_tile // 2 // 128) * 128)   # stay lane-dense
            if half == l_tile:
                break
            l_tile = half
        else:
            break
    return nb, l_tile


def structural_descriptor(normal, corner, w_corr, b_corr, w_rot, b_rot,
                          *, out_dtype=jnp.float32, max_l_tile=16384):
    """normal: (N, 3, L), corner: (N, 9, L) -> (N, 128, L).

    out_dtype defaults to float32 (matches PyTorch).  The kernel is HBM-writeback
    bound, so pass jnp.bfloat16 here for ~2x if downstream tolerates it; the matmul,
    bias and ReLU stay in fp32 and only the final store is cast.
    """
    N, _, L = normal.shape
    assert corner.shape == (N, 9, L), corner.shape

    out_itemsize = jnp.dtype(out_dtype).itemsize
    nb, l_tile = _choose_blocking(N, L, out_itemsize, max_l_tile)
    grid = (pl.cdiv(N, nb), pl.cdiv(L, l_tile))

    w_corr = w_corr.reshape(64, 3).astype(jnp.float32)
    w_rot = w_rot.reshape(64, 9).astype(jnp.float32)
    b_corr = b_corr.reshape(64, 1).astype(jnp.float32)
    b_rot = b_rot.reshape(64, 1).astype(jnp.float32)

    cost = pl.CostEstimate(
        flops=2 * 128 * 12 * N * L,
        transcendentals=0,
        bytes_accessed=(normal.dtype.itemsize * 3 * N * L
                        + corner.dtype.itemsize * 9 * N * L
                        + out_itemsize * 128 * N * L
                        + 4 * (64 * 3 + 64 * 9 + 128)),
    )

    return pl.pallas_call(
        _structural_descriptor_kernel,
        out_shape=jax.ShapeDtypeStruct((N, 128, L), out_dtype),
        grid_spec=pltpu.PrefetchScalarGridSpec(
            num_scalar_prefetch=0,
            grid=grid,
            in_specs=[
                pl.BlockSpec((nb, 3, l_tile), lambda n, l: (n, 0, l)),   # normal
                pl.BlockSpec((nb, 9, l_tile), lambda n, l: (n, 0, l)),   # corner
                pl.BlockSpec((64, 3), lambda n, l: (0, 0)),              # w_corr (resident)
                pl.BlockSpec((64, 9), lambda n, l: (0, 0)),              # w_rot  (resident)
                pl.BlockSpec((64, 1), lambda n, l: (0, 0)),              # b_corr
                pl.BlockSpec((64, 1), lambda n, l: (0, 0)),              # b_rot
            ],
            out_specs=pl.BlockSpec((nb, 128, l_tile), lambda n, l: (n, 0, l)),
        ),
        compiler_params=pltpu.CompilerParams(
            dimension_semantics=("parallel", "parallel"),
            # Explicit limit: covers double-buffered 8 MiB output tiles on v5e's
            # 16 MiB scoped default, still well under v7x's 64 MiB physical VMEM.
            vmem_limit_bytes=32 << 20,
        ),
        cost_estimate=cost,
    )(normal, corner, w_corr, w_rot, b_corr, b_rot)


def _reference(normal, corner, w_corr, b_corr, w_rot, b_rot):
    # Plain-JAX reference of the PyTorch forward (1x1 Conv1d == einsum over channels).
    corr = jnp.einsum("oc,ncl->nol", w_corr, normal) + b_corr[None, :, None]
    corr = jnp.maximum(corr, 0.0)
    rot = jnp.einsum("oc,ncl->nol", w_rot, corner) + b_rot[None, :, None]
    rot = jnp.maximum(rot, 0.0)
    return jnp.concatenate([corr, rot], axis=1)


if __name__ == "__main__":
    key = jax.random.PRNGKey(0)
    k_n, k_c, k_wc, k_bc, k_wr, k_br = jax.random.split(key, 6)

    N, L = 2, 1024  # small batch; L lane-dense (multiple of 128)
    normal = jax.random.normal(k_n, (N, 3, L), dtype=jnp.float32)
    corner = jax.random.normal(k_c, (N, 9, L), dtype=jnp.float32)

    # Deterministic synthetic parameters (Conv1d(3,64,1) and Conv1d(9,64,1), kernel dim squeezed).
    w_corr = 0.1 * jax.random.normal(k_wc, (64, 3), dtype=jnp.float32)
    b_corr = 0.1 * jax.random.normal(k_bc, (64,), dtype=jnp.float32)
    w_rot = 0.1 * jax.random.normal(k_wr, (64, 9), dtype=jnp.float32)
    b_rot = 0.1 * jax.random.normal(k_br, (64,), dtype=jnp.float32)

    out = structural_descriptor(normal, corner, w_corr, b_corr, w_rot, b_rot)
    out = jax.block_until_ready(out)

    ref = _reference(normal, corner, w_corr, b_corr, w_rot, b_rot)
    assert out.shape == (N, 128, L), out.shape
    assert jnp.allclose(out, ref, atol=1e-4, rtol=1e-4), float(jnp.max(jnp.abs(out - ref)))

    print("KERNEL_OK")
</pallas_src>

<mosaic_0001>
module attributes {stable_mosaic.version = 11 : i64} {
  func.func @_structural_descriptor_kernel(%arg0: i32, %arg1: i32, %arg2: memref<1x3x1024xf32, #tpu.memory_space<vmem>>, %arg3: memref<1x9x1024xf32, #tpu.memory_space<vmem>>, %arg4: memref<64x3xf32, #tpu.memory_space<vmem>>, %arg5: memref<64x9xf32, #tpu.memory_space<vmem>>, %arg6: memref<64x1xf32, #tpu.memory_space<vmem>>, %arg7: memref<64x1xf32, #tpu.memory_space<vmem>>, %arg8: memref<1x128x1024xf32, #tpu.memory_space<vmem>>) attributes {dimension_semantics = [#tpu.dimension_semantics<parallel>, #tpu.dimension_semantics<parallel>], iteration_bounds = array<i64: 2, 1>, scalar_prefetch = 0 : i64, scratch_operands = 0 : i64, tpu.core_type = #tpu.core_type<tc>, window_params = [{transform_indices = @transform_0, window_bounds = array<i64: 1, 3, 1024>}, {transform_indices = @transform_1, window_bounds = array<i64: 1, 9, 1024>}, {pipeline_mode = #tpu.pipeline_mode<synchronous>, transform_indices = @transform_2, window_bounds = array<i64: 64, 3>}, {pipeline_mode = #tpu.pipeline_mode<synchronous>, transform_indices = @transform_3, window_bounds = array<i64: 64, 9>}, {pipeline_mode = #tpu.pipeline_mode<synchronous>, transform_indices = @transform_4, window_bounds = array<i64: 64, 1>}, {pipeline_mode = #tpu.pipeline_mode<synchronous>, transform_indices = @transform_5, window_bounds = array<i64: 64, 1>}, {transform_indices = @transform_6, window_bounds = array<i64: 1, 128, 1024>}]} {
    %c0 = arith.constant 0 : index
    %c0_0 = arith.constant 0 : index
    %0 = vector.load %arg4[%c0, %c0_0] : memref<64x3xf32, #tpu.memory_space<vmem>>, vector<64x3xf32>
    %c0_1 = arith.constant 0 : index
    %c0_2 = arith.constant 0 : index
    %c0_3 = arith.constant 0 : index
    %1 = vector.load %arg2[%c0_1, %c0_2, %c0_3] : memref<1x3x1024xf32, #tpu.memory_space<vmem>>, vector<1x3x1024xf32>
    %2 = vector.shape_cast %1 : vector<1x3x1024xf32> to vector<3x1024xf32>
    %cst = arith.constant dense<0.000000e+00> : vector<64x1024xf32>
    %3 = tpu.matmul %0, %2, %cst {dimension_numbers = #tpu.dot_dimension_numbers<[1], [0], [0], [1], [0, 0, 1, 1], [], []>} : vector<64x3xf32>, vector<3x1024xf32>, vector<64x1024xf32> -> vector<64x1024xf32>
    %c0_4 = arith.constant 0 : index
    %c0_5 = arith.constant 0 : index
    %4 = vector.load %arg5[%c0_4, %c0_5] : memref<64x9xf32, #tpu.memory_space<vmem>>, vector<64x9xf32>
    %c0_6 = arith.constant 0 : index
    %c0_7 = arith.constant 0 : index
    %c0_8 = arith.constant 0 : index
    %5 = vector.load %arg3[%c0_6, %c0_7, %c0_8] : memref<1x9x1024xf32, #tpu.memory_space<vmem>>, vector<1x9x1024xf32>
    %6 = vector.shape_cast %5 : vector<1x9x1024xf32> to vector<9x1024xf32>
    %cst_9 = arith.constant dense<0.000000e+00> : vector<64x1024xf32>
    %7 = tpu.matmul %4, %6, %cst_9 {dimension_numbers = #tpu.dot_dimension_numbers<[1], [0], [0], [1], [0, 0, 1, 1], [], []>} : vector<64x9xf32>, vector<9x1024xf32>, vector<64x1024xf32> -> vector<64x1024xf32>
    %c0_10 = arith.constant 0 : index
    %c0_11 = arith.constant 0 : index
    %8 = vector.load %arg6[%c0_10, %c0_11] : memref<64x1xf32, #tpu.memory_space<vmem>>, vector<64x1xf32>
    %9 = vector.broadcast %8 : vector<64x1xf32> to vector<64x1024xf32>
    %10 = arith.addf %3, %9 : vector<64x1024xf32>
    %cst_12 = arith.constant 0.000000e+00 : f32
    %11 = vector.broadcast %cst_12 : f32 to vector<64x1024xf32>
    %12 = arith.maximumf %10, %11 : vector<64x1024xf32>
    %c0_13 = arith.constant 0 : index
    %c0_14 = arith.constant 0 : index
    %c0_15 = arith.constant 0 : index
    %13 = vector.load %arg8[%c0_13, %c0_14, %c0_15] : memref<1x128x1024xf32, #tpu.memory_space<vmem>>, vector<1x64x1024xf32>
    %14 = vector.shape_cast %13 : vector<1x64x1024xf32> to vector<64x1024xf32>
    %15 = vector.shape_cast %12 : vector<64x1024xf32> to vector<1x64x1024xf32>
    tpu.vector_store %arg8[%c0_13, %c0_14, %c0_15], %15 {strides = array<i32>} : memref<1x128x1024xf32, #tpu.memory_space<vmem>>, vector<1x64x1024xf32>,
    %c0_16 = arith.constant 0 : index
    %c0_17 = arith.constant 0 : index
    %16 = vector.load %arg7[%c0_16, %c0_17] : memref<64x1xf32, #tpu.memory_space<vmem>>, vector<64x1xf32>
    %17 = vector.broadcast %16 : vector<64x1xf32> to vector<64x1024xf32>
    %18 = arith.addf %7, %17 : vector<64x1024xf32>
    %cst_18 = arith.constant 0.000000e+00 : f32
    %19 = vector.broadcast %cst_18 : f32 to vector<64x1024xf32>
    %20 = arith.maximumf %18, %19 : vector<64x1024xf32>
    %c0_19 = arith.constant 0 : index
    %c64 = arith.constant 64 : index
    %c0_20 = arith.constant 0 : index
    %21 = vector.load %arg8[%c0_19, %c64, %c0_20] : memref<1x128x1024xf32, #tpu.memory_space<vmem>>, vector<1x64x1024xf32>
    %22 = vector.shape_cast %21 : vector<1x64x1024xf32> to vector<64x1024xf32>
    %23 = vector.shape_cast %20 : vector<64x1024xf32> to vector<1x64x1024xf32>
    tpu.vector_store %arg8[%c0_19, %c64, %c0_20], %23 {strides = array<i32>} : memref<1x128x1024xf32, #tpu.memory_space<vmem>>, vector<1x64x1024xf32>,
    return
  }
  func.func @transform_0(%arg0: i32, %arg1: i32) -> (i32, i32, i32) {
    %c0_i32 = arith.constant 0 : i32
    %c0_i32_0 = arith.constant 0 : i32
    return %arg0, %c0_i32, %arg1 : i32, i32, i32
  }
  func.func @transform_1(%arg0: i32, %arg1: i32) -> (i32, i32, i32) {
    %c0_i32 = arith.constant 0 : i32
    %c0_i32_0 = arith.constant 0 : i32
    return %arg0, %c0_i32, %arg1 : i32, i32, i32
  }
  func.func @transform_2(%arg0: i32, %arg1: i32) -> (i32, i32) {
    %c0_i32 = arith.constant 0 : i32
    %c0_i32_0 = arith.constant 0 : i32
    %c0_i32_1 = arith.constant 0 : i32
    return %c0_i32, %c0_i32_0 : i32, i32
  }
  func.func @transform_3(%arg0: i32, %arg1: i32) -> (i32, i32) {
    %c0_i32 = arith.constant 0 : i32
    %c0_i32_0 = arith.constant 0 : i32
    %c0_i32_1 = arith.constant 0 : i32
    return %c0_i32, %c0_i32_0 : i32, i32
  }
  func.func @transform_4(%arg0: i32, %arg1: i32) -> (i32, i32) {
    %c0_i32 = arith.constant 0 : i32
    %c0_i32_0 = arith.constant 0 : i32
    %c0_i32_1 = arith.constant 0 : i32
    return %c0_i32, %c0_i32_0 : i32, i32
  }
  func.func @transform_5(%arg0: i32, %arg1: i32) -> (i32, i32) {
    %c0_i32 = arith.constant 0 : i32
    %c0_i32_0 = arith.constant 0 : i32
    %c0_i32_1 = arith.constant 0 : i32
    return %c0_i32, %c0_i32_0 : i32, i32
  }
  func.func @transform_6(%arg0: i32, %arg1: i32) -> (i32, i32, i32) {
    %c0_i32 = arith.constant 0 : i32
    %c0_i32_0 = arith.constant 0 : i32
    return %arg0, %c0_i32, %arg1 : i32, i32, i32
  }
}

</mosaic_0001>

<bundles_post_ra>
// kernel: tpu_custom_call.1
= control target key start
LH: loop header
LB: loop body
LE: loop exit
PB: predicated region body
PF: predicated region fallthrough
CT: control target
= control target key end

     0   :  { %11 = vsyncpa [#allocation3], 0  ;;  %s2715_s0 = inlined_call_operand.vmem [shape: f32[2,3,1024], index: 0, kind: input, shape index: {}]   ;;  %s2716_s1 = inlined_call_operand.vmem [shape: f32[2,9,1024], index: 1, kind: input, shape index: {}]   ;;  %s2717_s2 = inlined_call_operand.vmem [shape: f32[64,3], index: 2, kind: input, shape index: {}]   ;;  %s2718_s3 = inlined_call_operand.vmem [shape: f32[64,9], index: 3, kind: input, shape index: {}]   ;;  %s2719_s4 = inlined_call_operand.vmem [shape: f32[64,1], index: 4, kind: input, shape index: {}]   ;;  %s2720_s5 = inlined_call_operand.vmem [shape: f32[64,1], index: 5, kind: input, shape index: {}]   ;;  %s2721_s6 = inlined_call_operand.hbm [shape: f32[2,128,1024], index: 6, kind: output, shape index: {}]  }
   0x1   :  { %13 = vsyncpa [#allocation3 + $0x1], 0  ;;  %s1928_s21 = smov 0   ;;  %s1930_s22 = smov 0  }
   0x2   :  { %s1932_s23 = smov 0   ;;  %s1934_s24 = smov 0  }
   0x3   :  { %s1936_s25 = smov 0   ;;  %s1938_s26 = smov 0  }
   0x4 LB: > { %s1587_s27 = sadd.s32 4294967295, %s1888_s26   ;;  %s1588_s28 = sadd.s32 4294967294, %s1888_s26   ;;  %s1888_s26 = sphi %s1938_s26, %s19_s26   ;;  %s1884_s25 = sphi %s1936_s25, %s2728_s25   ;;  %s1880_s24 = sphi %s1934_s24, %s2727_s24   ;;  %s1876_s23 = sphi %s1932_s23, %s2726_s23   ;;  %s1872_s22 = sphi %s1930_s22, %s2725_s22   ;;  %s1868_s21 = sphi %s1928_s21, %s2724_s21  }
   0x5   : > { %s31_s29 = sadd.s32 1, %s1884_s25  ;;  %s180_s30 = sadd.s32 1, %s1876_s23 }
   0x6   : > { %p33_p0 = scmp.ge.s32.totalorder %s31_s29, 2  ;;  %p190_p1 = scmp.ne.s32.totalorder %s1876_s23, %s1872_s22 }
   0x7   : > { %p191_p2 = scmp.eq.s32.totalorder %s1587_s27, 1  ;;  %p196_p3 = scmp.ne.s32.totalorder %s1872_s22, %s1868_s21 }
   0x8   : > { %s2730_s29 = smov (%p33_p0, %s31_s29), 0  ;;  %p197_p5 = scmp.eq.s32.totalorder %s1588_s28, 1 }
   0x9   : > { %p1968_p4 = por %p191_p2, %p190_p1  ;;  %s175_s8 = ssub.s32 %s1884_s25, %s2730_s29 }
   0xa   : > { %p1591_p6 = scmp.ge.s32.totalorder %s1888_s26, 1  ;;  %p178_p7 = scmp.eq.s32.totalorder %s175_s8, 0 }
   0xb   : > { %p1975_p8 = por %p197_p5, %p196_p3  ;;  %p253_p9 = scmp.lt.s32.totalorder %s1888_s26, 3 }
   0xc   : > { %s1981_s10 = scalar_select %p178_p7, %s1876_s23, %s180_s30  }
   0xd   : > { %p254_p10 = pnand %p1591_p6, %p253_p9 }
   0xe   : > { %p297_p11 = scmp.lt.s32.totalorder (!%p254_p10), %s1880_s24, 1  ;;  %s293_s12 = sand.u32 (!%p254_p10), 1, %s1872_s22  }
   0xf   : > { %257 = sbr.rel (%p254_p10) target bundleno = 425 (0x1a9), region = 44  ;;  %s1592_s15 = sshll.u32 (!%p254_p10), %s293_s12, 10 }
  0x10   : > { %s2210_s18 = scalar_lea.vmem (!%p254_p10), [#allocation2], %s1592_s15  ;;  %s1748_s30 = sshll.u32 (!%p254_p10), %s1880_s24, 10 }
  0x11   : > { %s1486_s13 = scalar_lea.hbm (!%p254_p10), %s2721_s6, %s1748_s30  ;;  %s1473_s15 = scalar_lea.sflag (!%p254_p10), [#allocation3], %s293_s12 }
  0x12   : > { %s1830_s27 = scalar_lea.hbm (!%p254_p10), %s2721_s6, 2048 }
  0x14   : > { %v1890_v0 = vmov 0   ;;  %s1985_s11 = scalar_select %p297_p11, %s1880_s24, 1  ;;  %v353_v1 = vld [vmem:[%s2719_s4] sm:$0xff]  ;;  %v354_v6 = vld [vmem:[%s2719_s4 + $0x8] sm:$0xff]  ;;  %vm445_vm0 = vcmask 1042432   ;;  %vm420_vm1 = vcmask 23552  }
  0x15   : > { %1807 = vset.pattern.permute.xlu0 %v1890_v0  ;;  %1808 = vset.pattern.permute.xlu1 %v1890_v0  ;;  %v2000_v7 = vld [vmem:[%s2717_s2] sm:$0xff]  ;;  %v355_v16 = vld [vmem:[%s2719_s4 + $0x10] sm:$0xff]  ;;  %v2024_v17 = vld [vmem:[%s2717_s2 + $0x8] sm:$0xff]  ;;  %vm991_vm2 = vcmask 1040384   ;;  %vm966_vm3 = vcmask 72704   ;;  %s1489_s24 = sshll.u32 %s1486_s13, 4  ;;  %s1490_s24 = int_to_ptr.hbm [resolvable:$true] %s1489_s24 }
  0x16   : > { %1809 = vset.pattern.permute.xlu2 %v1890_v0  ;;  %363 = vperm.xlu0 %1807, %v353_v1   ;;  %s1746_s14 = sshll.u32 %s1985_s11, 5  ;;  %v356_v18 = vld [vmem:[%s2719_s4 + $0x18] sm:$0xff]  ;;  %v2040_v19 = vld [vmem:[%s2717_s2 + $0x10] sm:$0xff]  ;;  %s1747_s19 = sshll.u32 %s1985_s11, 7  ;;  %v2067_v21 = vld [vmem:[%s2717_s2 + $0x20] sm:$0xff] }
  0x17   : > { %s304_s17 = scalar_lea.vmem %s2715_s0, %s1746_s14  ;;  %373 = vperm.xlu1 %1808, %v355_v16   ;;  %v2053_v20 = vld [vmem:[%s2717_s2 + $0x18] sm:$0xff]  ;;  %s2072_s8 = scalar_lea.vmem %s2716_s1, %s1747_s19  ;;  %v359_v24 = vld [vmem:[%s2719_s4 + $0x30] sm:$0xff]  ;;  %v322_v27 = vld [vmem:[%s2717_s2 + $0x28] sm:$0xff] }
  0x18   : > { %v325_v2 = vld [vmem:[%s304_s17] sm:$0x77]  ;;  %v326_v3 = vld [vmem:[%s304_s17 + $0x8] sm:$0x77]  ;;  %v328_v4 = vld [vmem:[%s304_s17 + $0x18] sm:$0x77] }
  0x19   : > { %405 = vst [vmem:[#allocation1] ss:$2 sm:$0xff] %v325_v2  ;;  %v327_v5 = vld [vmem:[%s304_s17 + $0x10] sm:$0x77]  ;;  %v348_v23 = vld [vmem:[%s2072_s8 + $0x58] sm:$0x1] }
  0x1a   : > { %407 = vst [vmem:[#allocation1 + $0x10] ss:$2 sm:$0xff] %v326_v3  ;;  %v347_v22 = vld [vmem:[%s2072_s8 + $0x50] sm:$0x1]  ;;  %v345_v25 = vld [vmem:[%s2072_s8 + $0x40] sm:$0x1] }
  0x1b   : > { %411 = vst [vmem:[#allocation1 + $0x30] ss:$2 sm:$0xff] %v328_v4  ;;  %v346_v26 = vld [vmem:[%s2072_s8 + $0x48] sm:$0x1]  ;;  %v357_v28 = vld [vmem:[%s2719_s4 + $0x20] sm:$0xff]  ;;  %v360_v29 = vld [vmem:[%s2719_s4 + $0x38] sm:$0xff] }
  0x1c   : > { %409 = vst [vmem:[#allocation1 + $0x20] ss:$2 sm:$0xff] %v327_v5  ;;  %383 = vperm.xlu2 %1809, %v357_v28   ;;  %v323_v30 = vld [vmem:[%s2717_s2 + $0x30] sm:$0xff]  ;;  %v358_v31 = vld [vmem:[%s2719_s4 + $0x28] sm:$0xff]  ;;  %v324_v32 = vld [vmem:[%s2717_s2 + $0x38] sm:$0xff]  ;;  %s1487_s14 = sshll.u32 %s2210_s18, 4  ;;  %s1488_s14 = int_to_ptr.vmem [resolvable:$true] %s1487_s14 }
  0x1d   : > { %v339_v33 = vld [vmem:[%s2072_s8 + $0x10] sm:$0xff]  ;;  %v340_v34 = vld [vmem:[%s2072_s8 + $0x18] sm:$0xff]  ;;  %v337_v35 = vld [vmem:[%s2072_s8] sm:$0xff]  ;;  %s1824_s16 = sshra.s32 %s1490_s24, 4  ;;  %s1825_s16 = int_to_ptr.hbm [resolvable:$true] %s1824_s16 }
  0x1e   : > { %368 = vperm.xlu0 %1807, %v354_v6   ;;  %v338_v36 = vld [vmem:[%s2072_s8 + $0x8] sm:$0xff]  ;;  %v351_v37 = vld [vmem:[%s2072_s8 + $0x70] sm:$0x1]  ;;  %v352_v38 = vld [vmem:[%s2072_s8 + $0x78] sm:$0x1]  ;;  %s1826_s17 = scalar_lea.hbm %s1825_s16, 1024  ;;  %p1831_p1 = scmp.lt.s32.totalorder %s1825_s16, %s2721_s6 }
  0x1f   : > { %378 = vperm.xlu1 %1808, %v356_v18   ;;  %v349_v39 = vld [vmem:[%s2072_s8 + $0x60] sm:$0x1]  ;;  %v350_v40 = vld [vmem:[%s2072_s8 + $0x68] sm:$0x1]  ;;  %v343_v50 = vld [vmem:[%s2072_s8 + $0x30] sm:$0xff]  ;;  %p1827_p12 = scmp.ne.s32.totalorder %s1825_s16, %s1826_s17  ;;  %p1832_p2 = scmp.lt.s32.totalorder %s1830_s27, %s1826_s17 }
  0x20   : > { %v412_v8 = vld.sshfl [vmem:[#allocation1] sm:$0xff pattern:$0x75316420]  ;;  %v413_v9 = vld.sshfl [vmem:[#allocation1 + $0x8] sm:$0xff pattern:$0x75316420] }
  0x21   : > { %1597 = vmatpush.msk.msra.mxu0 %vm445_vm0, %v412_v8  ;;  %1606 = vmatpush.msk.msra.mxu1 %vm445_vm0, %v413_v9  ;;  %v414_v10 = vld.sshfl [vmem:[#allocation1 + $0x10] sm:$0xff pattern:$0x75316420]  ;;  %v415_v11 = vld.sshfl [vmem:[#allocation1 + $0x18] sm:$0xff pattern:$0x75316420]  ;;  %p1828_p13 = pnand %p1827_p12, %p1968_p4  ;;  %p1833_p3 = por %p1832_p2, %p1831_p1 }
  0x22   : > { %1615 = vmatpush.msk.msra.mxu2 %vm445_vm0, %v414_v10  ;;  %1624 = vmatpush.msk.msra.mxu3 %vm445_vm0, %v415_v11  ;;  %v418_v12 = vld.sshfl [vmem:[#allocation1 + $0x30] sm:$0xff pattern:$0x75316420]  ;;  %v419_v13 = vld.sshfl [vmem:[#allocation1 + $0x38] sm:$0xff pattern:$0x75316420] }
  0x23   : > { %1598 = vmatmul.msk.f32.vlgmr.msra.gmra.mxu0 %vm420_vm1, %v2000_v7  ;;  %1607 = vmatmul.msk.f32.vlgmr.msra.gmra.mxu1 %vm420_vm1, %v2000_v7  ;;  %v416_v14 = vld.sshfl [vmem:[#allocation1 + $0x20] sm:$0xff pattern:$0x75316420]  ;;  %v417_v15 = vld.sshfl [vmem:[#allocation1 + $0x28] sm:$0xff pattern:$0x75316420]  ;;  %p1829_p0 = pneg %p1828_p13 }
  0x24   : > { %1616 = vmatmul.msk.f32.vlgmr.msra.gmra.mxu2 %vm420_vm1, %v2000_v7  ;;  %1625 = vmatmul.msk.f32.vlgmr.msra.gmra.mxu3 %vm420_vm1, %v2000_v7  ;;  %v919_v42 = vld [vmem:[%s2720_s5 + $0x8] sm:$0xff]  ;;  %v2198_v45 = vld [vmem:[%s2718_s3] sm:$0xff]  ;;  %v344_v51 = vld [vmem:[%s2072_s8 + $0x38] sm:$0xff] }
  0x25   : > { %1651 = vmatpush.msk.msrb.mxu2 %vm445_vm0, %v418_v12  ;;  %1660 = vmatpush.msk.msrb.mxu3 %vm445_vm0, %v419_v13  ;;  %v920_v52 = vld [vmem:[%s2720_s5 + $0x10] sm:$0xff]  ;;  %v2226_v60 = vld [vmem:[%s2718_s3 + $0x8] sm:$0xff]  ;;  %v341_v4 = vld [vmem:[%s2072_s8 + $0x20] sm:$0xff]  ;;  %p1834_p5 = pnand %p1833_p3, %p1829_p0 }
  0x26   : > { %1633 = vmatpush.msk.msrb.mxu0 %vm445_vm0, %v416_v14  ;;  %1642 = vmatpush.msk.msrb.mxu1 %vm445_vm0, %v417_v15  ;;  %v342_v5 = vld [vmem:[%s2072_s8 + $0x28] sm:$0xff]  ;;  %v918_v6 = vld [vmem:[%s2720_s5] sm:$0xff]  ;;  %v2254_v13 = vld [vmem:[%s2718_s3 + $0x10] sm:$0xff] }
  0x27   : > { %1687 = vmatpush.msk.msra.mxu2 %vm991_vm2, %v347_v22  ;;  %1696 = vmatpush.msk.msra.mxu3 %vm991_vm2, %v348_v23  ;;  %v2280_v28 = vld [vmem:[%s2718_s3 + $0x18] sm:$0xff] }
  0x28   : > { %393 = vperm.xlu0 %1807, %v359_v24   ;;  %1669 = vmatpush.msk.msra.mxu0 %vm991_vm2, %v345_v25 }
  0x29   : > { %1678 = vmatpush.msk.msra.mxu1 %vm991_vm2, %v346_v26  ;;  %398 = vperm.xlu1 %1808, %v360_v29  }
  0x2a   : > { %388 = vperm.xlu2 %1809, %v358_v31   ;;  %1113 = vmatpush.msra.mxu2 %v339_v33 }
  0x2b   : > { %1599 = vmatmul.msk.f32.gmra.mxu0 %vm420_vm1, %v2024_v17  ;;  %1608 = vmatmul.msk.f32.gmra.mxu1 %vm420_vm1, %v2024_v17 }
  0x2c   : > { %1617 = vmatmul.msk.f32.gmra.mxu2 %vm420_vm1, %v2024_v17  ;;  %1626 = vmatmul.msk.f32.gmra.mxu3 %vm420_vm1, %v2024_v17 }
  0x2d   : > { %1154 = vmatpush.msra.mxu3 %v340_v34  ;;  %1031 = vmatpush.msra.mxu0 %v337_v35 }
  0x2e   : > { %1072 = vmatpush.msra.mxu1 %v338_v36  ;;  %v923_v36 = vld [vmem:[%s2720_s5 + $0x28] sm:$0xff] }
  0x30   : > { %933 = vperm.xlu0 %1807, %v919_v42  }
  0x31   : > { %938 = vperm.xlu1 %1808, %v920_v52   ;;  %v921_v52 = vld [vmem:[%s2720_s5 + $0x18] sm:$0xff] }
  0x32   : > { %928 = vperm.xlu2 %1809, %v918_v6   ;;  %v925_v6 = vld [vmem:[%s2720_s5 + $0x38] sm:$0xff] }
  0x33   : > { %1600 = vmatmul.msk.f32.gmra.mxu0 %vm420_vm1, %v2040_v19  ;;  %1609 = vmatmul.msk.f32.gmra.mxu1 %vm420_vm1, %v2040_v19 }
  0x34   : > { %1618 = vmatmul.msk.f32.gmra.mxu2 %vm420_vm1, %v2040_v19  ;;  %1627 = vmatmul.msk.f32.gmra.mxu3 %vm420_vm1, %v2040_v19 }
  0x39   : > { %953 = vperm.xlu1 %1808, %v923_v36  }
  0x3a   : > { %943 = vperm.xlu2 %1809, %v921_v52  }
  0x3b   : > { %1601 = vmatmul.msk.f32.gmra.mxu0 %vm420_vm1, %v2053_v20  ;;  %1610 = vmatmul.msk.f32.gmra.mxu1 %vm420_vm1, %v2053_v20 }
  0x3c   : > { %1619 = vmatmul.msk.f32.gmra.mxu2 %vm420_vm1, %v2053_v20  ;;  %1628 = vmatmul.msk.f32.gmra.mxu3 %vm420_vm1, %v2053_v20 }
  0x43   : > { %1602 = vmatmul.msk.f32.gmra.mxu0 %vm420_vm1, %v2067_v21  ;;  %1611 = vmatmul.msk.f32.gmra.mxu1 %vm420_vm1, %v2067_v21 }
  0x44   : > { %1620 = vmatmul.msk.f32.gmra.mxu2 %vm420_vm1, %v2067_v21  ;;  %1629 = vmatmul.msk.f32.gmra.mxu3 %vm420_vm1, %v2067_v21 }
  0x4b   : > { %1603 = vmatmul.msk.f32.gmra.mxu0 %vm420_vm1, %v322_v27  ;;  %1612 = vmatmul.msk.f32.gmra.mxu1 %vm420_vm1, %v322_v27 }
  0x4c   : > { %1621 = vmatmul.msk.f32.gmra.mxu2 %vm420_vm1, %v322_v27  ;;  %1630 = vmatmul.msk.f32.gmra.mxu3 %vm420_vm1, %v322_v27 }
  0x53   : > { %1604 = vmatmul.msk.f32.gmra.mxu0 %vm420_vm1, %v323_v30  ;;  %1613 = vmatmul.msk.f32.gmra.mxu1 %vm420_vm1, %v323_v30 }
  0x54   : > { %1622 = vmatmul.msk.f32.gmra.mxu2 %vm420_vm1, %v323_v30  ;;  %1631 = vmatmul.msk.f32.gmra.mxu3 %vm420_vm1, %v323_v30 }
  0x5b   : > { %1605 = vmatmul.msk.f32.gmra.mxu0 %vm420_vm1, %v324_v32  ;;  %1614 = vmatmul.msk.f32.gmra.mxu1 %vm420_vm1, %v324_v32 }
  0x5c   : > { %1623 = vmatmul.msk.f32.gmra.mxu2 %vm420_vm1, %v324_v32  ;;  %1632 = vmatmul.msk.f32.gmra.mxu3 %vm420_vm1, %v324_v32 }
  0x63   : > { %1634 = vmatmul.msk.f32.vlgmr.msrb.gmra.mxu0 %vm420_vm1, %v2000_v7  ;;  %1643 = vmatmul.msk.f32.vlgmr.msrb.gmra.mxu1 %vm420_vm1, %v2000_v7 }
  0x64   : > { %1652 = vmatmul.msk.f32.vlgmr.msrb.gmra.mxu2 %vm420_vm1, %v2000_v7  ;;  %1661 = vmatmul.msk.f32.vlgmr.msrb.gmra.mxu3 %vm420_vm1, %v2000_v7 }
  0x65   : > { %1723 = vmatpush.msk.msrb.mxu2 %vm991_vm2, %v351_v37  ;;  %1732 = vmatpush.msk.msrb.mxu3 %vm991_vm2, %v352_v38 }
  0x66   : > { %1705 = vmatpush.msk.msrb.mxu0 %vm991_vm2, %v349_v39  ;;  %1714 = vmatpush.msk.msrb.mxu1 %vm991_vm2, %v350_v40 }
  0x67   : > { %1277 = vmatpush.msrb.mxu2 %v343_v50  ;;  %1318 = vmatpush.msrb.mxu3 %v344_v51 }
  0x68   : > { %1195 = vmatpush.msrb.mxu0 %v341_v4  ;;  %1236 = vmatpush.msrb.mxu1 %v342_v5 }
  0x6b   : > { %1635 = vmatmul.msk.f32.gmra.mxu0 %vm420_vm1, %v2024_v17  ;;  %1644 = vmatmul.msk.f32.gmra.mxu1 %vm420_vm1, %v2024_v17 }
  0x6c   : > { %1653 = vmatmul.msk.f32.gmra.mxu2 %vm420_vm1, %v2024_v17  ;;  %1662 = vmatmul.msk.f32.gmra.mxu3 %vm420_vm1, %v2024_v17 }
  0x73   : > { %1636 = vmatmul.msk.f32.gmra.mxu0 %vm420_vm1, %v2040_v19  ;;  %1645 = vmatmul.msk.f32.gmra.mxu1 %vm420_vm1, %v2040_v19 }
  0x74   : > { %1654 = vmatmul.msk.f32.gmra.mxu2 %vm420_vm1, %v2040_v19  ;;  %1663 = vmatmul.msk.f32.gmra.mxu3 %vm420_vm1, %v2040_v19 }
  0x76   : > { %v2293_v35 = vpop.permute.xlu2 %383 }
  0x7b   : > { %1637 = vmatmul.msk.f32.gmra.mxu0 %vm420_vm1, %v2053_v20  ;;  %1646 = vmatmul.msk.f32.gmra.mxu1 %vm420_vm1, %v2053_v20 }
  0x7c   : > { %1655 = vmatmul.msk.f32.gmra.mxu2 %vm420_vm1, %v2053_v20  ;;  %1664 = vmatmul.msk.f32.gmra.mxu3 %vm420_vm1, %v2053_v20  ;;  %v922_v20 = vld [vmem:[%s2720_s5 + $0x20] sm:$0xff] }
  0x7d   : > { %948 = vperm.xlu0 %1807, %v922_v20  }
  0x83   : > { %1638 = vmatmul.msk.f32.gmra.mxu0 %vm420_vm1, %v2067_v21  ;;  %1647 = vmatmul.msk.f32.gmra.mxu1 %vm420_vm1, %v2067_v21 }
  0x84   : > { %1656 = vmatmul.msk.f32.gmra.mxu2 %vm420_vm1, %v2067_v21  ;;  %1665 = vmatmul.msk.f32.gmra.mxu3 %vm420_vm1, %v2067_v21 }
  0x85   : > { %963 = vperm.xlu0 %1807, %v925_v6  }
  0x88   : > { %v2187_v41 = vpop.permute.xlu0 %363 }
  0x89   : > { %v2239_v3 = vpop.permute.xlu1 %373 }
  0x8b   : > { %1639 = vmatmul.msk.f32.gmra.mxu0 %vm420_vm1, %v322_v27  ;;  %1648 = vmatmul.msk.f32.gmra.mxu1 %vm420_vm1, %v322_v27 }
  0x8c   : > { %1657 = vmatmul.msk.f32.gmra.mxu2 %vm420_vm1, %v322_v27  ;;  %1666 = vmatmul.msk.f32.gmra.mxu3 %vm420_vm1, %v322_v27 }
  0x90   : > { %v2219_v53 = vpop.permute.xlu0 %368 }
  0x91   : > { %v2272_v21 = vpop.permute.xlu1 %378 }
  0x93   : > { %1640 = vmatmul.msk.f32.gmra.mxu0 %vm420_vm1, %v323_v30  ;;  %1649 = vmatmul.msk.f32.gmra.mxu1 %vm420_vm1, %v323_v30 }
  0x94   : > { %1658 = vmatmul.msk.f32.gmra.mxu2 %vm420_vm1, %v323_v30  ;;  %1667 = vmatmul.msk.f32.gmra.mxu3 %vm420_vm1, %v323_v30 }
  0x9b   : > { %1641 = vmatmul.msk.f32.gmra.mxu0 %vm420_vm1, %v324_v32  ;;  %1650 = vmatmul.msk.f32.gmra.mxu1 %vm420_vm1, %v324_v32 }
  0x9c   : > { %1659 = vmatmul.msk.f32.gmra.mxu2 %vm420_vm1, %v324_v32  ;;  %1668 = vmatmul.msk.f32.gmra.mxu3 %vm420_vm1, %v324_v32 }
  0xa0   : > { %v479_v43 = vpop.f32.mrf.mxu0  ;;  %v520_v44 = vpop.f32.mrf.mxu1 }
  0xa1   : > { %v480_v46 = vadd.f32 %v479_v43, %v2187_v41  ;;  %v521_v47 = vadd.f32 %v520_v44, %v2187_v41  ;;  %v2306_v44 = vld [vmem:[%s2718_s3 + $0x20] sm:$0xff] }
  0xa3   : > { %1670 = vmatmul.msk.f32.vlgmr.msra.gmra.mxu0 %vm966_vm3, %v2198_v45  ;;  %1679 = vmatmul.msk.f32.vlgmr.msra.gmra.mxu1 %vm966_vm3, %v2198_v45  ;;  %v790_v48 = vmax.f32 %v480_v46, 0.0  ;;  %v791_v49 = vmax.f32 %v521_v47, 0.0 }
  0xa4   : > { %1688 = vmatmul.msk.f32.vlgmr.msra.gmra.mxu2 %vm966_vm3, %v2198_v45  ;;  %1697 = vmatmul.msk.f32.vlgmr.msra.gmra.mxu3 %vm966_vm3, %v2198_v45 }
  0xa5   : > { %854 = vst [vmem:[%s2210_s18] sm:$0xff] %v790_v48 }
  0xa6   : > { %855 = vst [vmem:[%s2210_s18 + $0x8] sm:$0xff] %v791_v49 }
  0xa7   : > { %v561_v54 = vpop.f32.mrf.mxu2  ;;  %v602_v55 = vpop.f32.mrf.mxu3 }
  0xa8   : > { %v562_v56 = vadd.f32 %v561_v54, %v2187_v41  ;;  %v603_v57 = vadd.f32 %v602_v55, %v2187_v41  ;;  %v482_v58 = vpop.f32.mrf.mxu0  ;;  %v523_v59 = vpop.f32.mrf.mxu1 }
  0xa9   : > { %v483_v61 = vadd.f32 %v482_v58, %v2219_v53  ;;  %v524_v62 = vadd.f32 %v523_v59, %v2219_v53  ;;  %v2324_v54 = vpop.permute.xlu2 %388 }
  0xaa   : > { %v792_v63 = vmax.f32 %v562_v56, 0.0  ;;  %v793_v0 = vmax.f32 %v603_v57, 0.0 }
  0xab   : > { %1671 = vmatmul.msk.f32.gmra.mxu0 %vm966_vm3, %v2226_v60  ;;  %1680 = vmatmul.msk.f32.gmra.mxu1 %vm966_vm3, %v2226_v60  ;;  %v798_v1 = vmax.f32 %v483_v61, 0.0  ;;  %v799_v2 = vmax.f32 %v524_v62, 0.0  ;;  %v2332_v62 = vld [vmem:[%s2718_s3 + $0x28] sm:$0xff] }
  0xac   : > { %856 = vst [vmem:[%s2210_s18 + $0x10] sm:$0xff] %v792_v63  ;;  %1689 = vmatmul.msk.f32.gmra.mxu2 %vm966_vm3, %v2226_v60  ;;  %1698 = vmatmul.msk.f32.gmra.mxu3 %vm966_vm3, %v2226_v60 }
  0xad   : > { %857 = vst [vmem:[%s2210_s18 + $0x18] sm:$0xff] %v793_v0 }
  0xae   : > { %862 = vst [vmem:[%s2210_s18 + $0x40] sm:$0xff] %v798_v1 }
  0xaf   : > { %863 = vst [vmem:[%s2210_s18 + $0x48] sm:$0xff] %v799_v2  ;;  %v564_v7 = vpop.f32.mrf.mxu2  ;;  %v605_v8 = vpop.f32.mrf.mxu3 }
  0xb0   : > { %v565_v9 = vadd.f32 %v564_v7, %v2219_v53  ;;  %v606_v10 = vadd.f32 %v605_v8, %v2219_v53  ;;  %v485_v11 = vpop.f32.mrf.mxu0  ;;  %v526_v12 = vpop.f32.mrf.mxu1 }
  0xb1   : > { %v486_v14 = vadd.f32 %v485_v11, %v2239_v3  ;;  %v527_v15 = vadd.f32 %v526_v12, %v2239_v3  ;;  %v2350_v7 = vpop.permute.xlu0 %393 }
  0xb2   : > { %v800_v16 = vmax.f32 %v565_v9, 0.0  ;;  %v801_v17 = vmax.f32 %v606_v10, 0.0 }
  0xb3   : > { %1672 = vmatmul.msk.f32.gmra.mxu0 %vm966_vm3, %v2254_v13  ;;  %1681 = vmatmul.msk.f32.gmra.mxu1 %vm966_vm3, %v2254_v13  ;;  %v806_v18 = vmax.f32 %v486_v14, 0.0  ;;  %v807_v19 = vmax.f32 %v527_v15, 0.0  ;;  %v2358_v15 = vld [vmem:[%s2718_s3 + $0x30] sm:$0xff] }
  0xb4   : > { %864 = vst [vmem:[%s2210_s18 + $0x50] sm:$0xff] %v800_v16  ;;  %1690 = vmatmul.msk.f32.gmra.mxu2 %vm966_vm3, %v2254_v13  ;;  %1699 = vmatmul.msk.f32.gmra.mxu3 %vm966_vm3, %v2254_v13 }
  0xb5   : > { %865 = vst [vmem:[%s2210_s18 + $0x58] sm:$0xff] %v801_v17 }
  0xb6   : > { %870 = vst [vmem:[%s2210_s18 + $0x80] sm:$0xff] %v806_v18 }
  0xb7   : > { %871 = vst [vmem:[%s2210_s18 + $0x88] sm:$0xff] %v807_v19  ;;  %v567_v22 = vpop.f32.mrf.mxu2  ;;  %v608_v23 = vpop.f32.mrf.mxu3 }
  0xb8   : > { %v568_v24 = vadd.f32 %v567_v22, %v2239_v3  ;;  %v609_v25 = vadd.f32 %v608_v23, %v2239_v3  ;;  %v488_v26 = vpop.f32.mrf.mxu0  ;;  %v529_v27 = vpop.f32.mrf.mxu1 }
  0xb9   : > { %v489_v29 = vadd.f32 %v488_v26, %v2272_v21  ;;  %v530_v30 = vadd.f32 %v529_v27, %v2272_v21  ;;  %v2373_v23 = vpop.permute.xlu1 %398 }
  0xba   : > { %v808_v31 = vmax.f32 %v568_v24, 0.0  ;;  %v809_v32 = vmax.f32 %v609_v25, 0.0 }
  0xbb   : > { %1673 = vmatmul.msk.f32.gmra.mxu0 %vm966_vm3, %v2280_v28  ;;  %1682 = vmatmul.msk.f32.gmra.mxu1 %vm966_vm3, %v2280_v28  ;;  %v814_v33 = vmax.f32 %v489_v29, 0.0  ;;  %v815_v34 = vmax.f32 %v530_v30, 0.0 }
  0xbc   : > { %872 = vst [vmem:[%s2210_s18 + $0x90] sm:$0xff] %v808_v31  ;;  %1691 = vmatmul.msk.f32.gmra.mxu2 %vm966_vm3, %v2280_v28  ;;  %1700 = vmatmul.msk.f32.gmra.mxu3 %vm966_vm3, %v2280_v28  ;;  %v2381_v31 = vld [vmem:[%s2718_s3 + $0x38] sm:$0xff] }
  0xbd   : > { %873 = vst [vmem:[%s2210_s18 + $0x98] sm:$0xff] %v809_v32 }
  0xbe   : > { %878 = vst [vmem:[%s2210_s18 + $0xc0] sm:$0xff] %v814_v33 }
  0xbf   : > { %879 = vst [vmem:[%s2210_s18 + $0xc8] sm:$0xff] %v815_v34  ;;  %v570_v37 = vpop.f32.mrf.mxu2  ;;  %v611_v38 = vpop.f32.mrf.mxu3 }
  0xc0   : > { %v571_v39 = vadd.f32 %v570_v37, %v2272_v21  ;;  %v612_v40 = vadd.f32 %v611_v38, %v2272_v21  ;;  %v491_v42 = vpop.f32.mrf.mxu0  ;;  %v532_v43 = vpop.f32.mrf.mxu1 }
  0xc1   : > { %v492_v46 = vadd.f32 %v491_v42, %v2293_v35  ;;  %v533_v47 = vadd.f32 %v532_v43, %v2293_v35 }
  0xc2   : > { %v816_v48 = vmax.f32 %v571_v39, 0.0  ;;  %v817_v49 = vmax.f32 %v612_v40, 0.0  ;;  %v924_v39 = vld [vmem:[%s2720_s5 + $0x30] sm:$0xff] }
  0xc3   : > { %1674 = vmatmul.msk.f32.gmra.mxu0 %vm966_vm3, %v2306_v44  ;;  %1683 = vmatmul.msk.f32.gmra.mxu1 %vm966_vm3, %v2306_v44  ;;  %v822_v50 = vmax.f32 %v492_v46, 0.0  ;;  %v823_v51 = vmax.f32 %v533_v47, 0.0 }
  0xc4   : > { %880 = vst [vmem:[%s2210_s18 + $0xd0] sm:$0xff] %v816_v48  ;;  %1692 = vmatmul.msk.f32.gmra.mxu2 %vm966_vm3, %v2306_v44  ;;  %1701 = vmatmul.msk.f32.gmra.mxu3 %vm966_vm3, %v2306_v44 }
  0xc5   : > { %881 = vst [vmem:[%s2210_s18 + $0xd8] sm:$0xff] %v817_v49  ;;  %958 = vperm.xlu2 %1809, %v924_v39  }
  0xc6   : > { %886 = vst [vmem:[%s2210_s18 + $0x100] sm:$0xff] %v822_v50 }
  0xc7   : > { %887 = vst [vmem:[%s2210_s18 + $0x108] sm:$0xff] %v823_v51  ;;  %v573_v55 = vpop.f32.mrf.mxu2  ;;  %v614_v56 = vpop.f32.mrf.mxu3 }
  0xc8   : > { %v574_v57 = vadd.f32 %v573_v55, %v2293_v35  ;;  %v615_v58 = vadd.f32 %v614_v56, %v2293_v35  ;;  %v494_v59 = vpop.f32.mrf.mxu0  ;;  %v535_v61 = vpop.f32.mrf.mxu1 }
  0xc9   : > { %v495_v63 = vadd.f32 %v494_v59, %v2324_v54  ;;  %v536_v0 = vadd.f32 %v535_v61, %v2324_v54 }
  0xca   : > { %v824_v1 = vmax.f32 %v574_v57, 0.0  ;;  %v825_v2 = vmax.f32 %v615_v58, 0.0 }
  0xcb   : > { %1675 = vmatmul.msk.f32.gmra.mxu0 %vm966_vm3, %v2332_v62  ;;  %1684 = vmatmul.msk.f32.gmra.mxu1 %vm966_vm3, %v2332_v62  ;;  %v830_v4 = vmax.f32 %v495_v63, 0.0  ;;  %v831_v5 = vmax.f32 %v536_v0, 0.0 }
  0xcc   : > { %888 = vst [vmem:[%s2210_s18 + $0x110] sm:$0xff] %v824_v1  ;;  %1693 = vmatmul.msk.f32.gmra.mxu2 %vm966_vm3, %v2332_v62  ;;  %1702 = vmatmul.msk.f32.gmra.mxu3 %vm966_vm3, %v2332_v62 }
  0xcd   : > { %889 = vst [vmem:[%s2210_s18 + $0x118] sm:$0xff] %v825_v2 }
  0xce   : > { %894 = vst [vmem:[%s2210_s18 + $0x140] sm:$0xff] %v830_v4 }
  0xcf   : > { %895 = vst [vmem:[%s2210_s18 + $0x148] sm:$0xff] %v831_v5  ;;  %v576_v8 = vpop.f32.mrf.mxu2  ;;  %v617_v9 = vpop.f32.mrf.mxu3 }
  0xd0   : > { %v577_v10 = vadd.f32 %v576_v8, %v2324_v54  ;;  %v618_v11 = vadd.f32 %v617_v9, %v2324_v54  ;;  %v497_v12 = vpop.f32.mrf.mxu0  ;;  %v538_v14 = vpop.f32.mrf.mxu1 }
  0xd1   : > { %v498_v16 = vadd.f32 %v497_v12, %v2350_v7  ;;  %v539_v17 = vadd.f32 %v538_v14, %v2350_v7 }
  0xd2   : > { %v832_v18 = vmax.f32 %v577_v10, 0.0  ;;  %v833_v19 = vmax.f32 %v618_v11, 0.0 }
  0xd3   : > { %1676 = vmatmul.msk.f32.gmra.mxu0 %vm966_vm3, %v2358_v15  ;;  %1685 = vmatmul.msk.f32.gmra.mxu1 %vm966_vm3, %v2358_v15  ;;  %v838_v20 = vmax.f32 %v498_v16, 0.0  ;;  %v839_v22 = vmax.f32 %v539_v17, 0.0 }
  0xd4   : > { %896 = vst [vmem:[%s2210_s18 + $0x150] sm:$0xff] %v832_v18  ;;  %1694 = vmatmul.msk.f32.gmra.mxu2 %vm966_vm3, %v2358_v15  ;;  %1703 = vmatmul.msk.f32.gmra.mxu3 %vm966_vm3, %v2358_v15 }
  0xd5   : > { %897 = vst [vmem:[%s2210_s18 + $0x158] sm:$0xff] %v833_v19 }
  0xd6   : > { %902 = vst [vmem:[%s2210_s18 + $0x180] sm:$0xff] %v838_v20 }
  0xd7   : > { %903 = vst [vmem:[%s2210_s18 + $0x188] sm:$0xff] %v839_v22  ;;  %v579_v24 = vpop.f32.mrf.mxu2  ;;  %v620_v25 = vpop.f32.mrf.mxu3 }
  0xd8   : > { %v580_v26 = vadd.f32 %v579_v24, %v2350_v7  ;;  %v621_v27 = vadd.f32 %v620_v25, %v2350_v7  ;;  %v500_v29 = vpop.f32.mrf.mxu0  ;;  %v541_v30 = vpop.f32.mrf.mxu1 }
  0xd9   : > { %v501_v32 = vadd.f32 %v500_v29, %v2373_v23  ;;  %v542_v33 = vadd.f32 %v541_v30, %v2373_v23 }
  0xda   : > { %v840_v34 = vmax.f32 %v580_v26, 0.0  ;;  %v841_v36 = vmax.f32 %v621_v27, 0.0 }
  0xdb   : > { %1677 = vmatmul.msk.f32.gmra.mxu0 %vm966_vm3, %v2381_v31  ;;  %1686 = vmatmul.msk.f32.gmra.mxu1 %vm966_vm3, %v2381_v31  ;;  %v846_v37 = vmax.f32 %v501_v32, 0.0  ;;  %v847_v38 = vmax.f32 %v542_v33, 0.0 }
  0xdc   : > { %904 = vst [vmem:[%s2210_s18 + $0x190] sm:$0xff] %v840_v34  ;;  %1695 = vmatmul.msk.f32.gmra.mxu2 %vm966_vm3, %v2381_v31  ;;  %1704 = vmatmul.msk.f32.gmra.mxu3 %vm966_vm3, %v2381_v31 }
  0xdd   : > { %905 = vst [vmem:[%s2210_s18 + $0x198] sm:$0xff] %v841_v36 }
  0xde   : > { %910 = vst [vmem:[%s2210_s18 + $0x1c0] sm:$0xff] %v846_v37 }
  0xdf   : > { %911 = vst [vmem:[%s2210_s18 + $0x1c8] sm:$0xff] %v847_v38  ;;  %v582_v40 = vpop.f32.mrf.mxu2  ;;  %v623_v42 = vpop.f32.mrf.mxu3 }
  0xe0   : > { %v583_v43 = vadd.f32 %v582_v40, %v2373_v23  ;;  %v624_v46 = vadd.f32 %v623_v42, %v2373_v23  ;;  %v643_v47 = vpop.f32.mrf.mxu0  ;;  %v684_v48 = vpop.f32.mrf.mxu1 }
  0xe1   : > { %v644_v49 = vadd.f32 %v643_v47, %v2187_v41  ;;  %v685_v50 = vadd.f32 %v684_v48, %v2187_v41 }
  0xe2   : > { %v848_v51 = vmax.f32 %v583_v43, 0.0  ;;  %v849_v52 = vmax.f32 %v624_v46, 0.0 }
  0xe3   : > { %v794_v55 = vmax.f32 %v644_v49, 0.0  ;;  %v795_v56 = vmax.f32 %v685_v50, 0.0  ;;  %1706 = vmatmul.msk.f32.vlgmr.msrb.gmra.mxu0 %vm966_vm3, %v2198_v45  ;;  %1715 = vmatmul.msk.f32.vlgmr.msrb.gmra.mxu1 %vm966_vm3, %v2198_v45 }
  0xe4   : > { %912 = vst [vmem:[%s2210_s18 + $0x1d0] sm:$0xff] %v848_v51  ;;  %1724 = vmatmul.msk.f32.vlgmr.msrb.gmra.mxu2 %vm966_vm3, %v2198_v45  ;;  %1733 = vmatmul.msk.f32.vlgmr.msrb.gmra.mxu3 %vm966_vm3, %v2198_v45 }
  0xe5   : > { %913 = vst [vmem:[%s2210_s18 + $0x1d8] sm:$0xff] %v849_v52 }
  0xe6   : > { %858 = vst [vmem:[%s2210_s18 + $0x20] sm:$0xff] %v794_v55 }
  0xe7   : > { %859 = vst [vmem:[%s2210_s18 + $0x28] sm:$0xff] %v795_v56  ;;  %v725_v57 = vpop.f32.mrf.mxu2  ;;  %v766_v58 = vpop.f32.mrf.mxu3 }
  0xe8   : > { %v726_v59 = vadd.f32 %v725_v57, %v2187_v41  ;;  %v767_v61 = vadd.f32 %v766_v58, %v2187_v41  ;;  %v646_v63 = vpop.f32.mrf.mxu0  ;;  %v687_v0 = vpop.f32.mrf.mxu1 }
  0xe9   : > { %v647_v1 = vadd.f32 %v646_v63, %v2219_v53  ;;  %v688_v2 = vadd.f32 %v687_v0, %v2219_v53 }
  0xea   : > { %v796_v45 = vmax.f32 %v726_v59, 0.0  ;;  %v797_v4 = vmax.f32 %v767_v61, 0.0 }
  0xeb   : > { %v802_v5 = vmax.f32 %v647_v1, 0.0  ;;  %v803_v6 = vmax.f32 %v688_v2, 0.0  ;;  %1707 = vmatmul.msk.f32.gmra.mxu0 %vm966_vm3, %v2226_v60  ;;  %1716 = vmatmul.msk.f32.gmra.mxu1 %vm966_vm3, %v2226_v60 }
  0xec   : > { %860 = vst [vmem:[%s2210_s18 + $0x30] sm:$0xff] %v796_v45  ;;  %1725 = vmatmul.msk.f32.gmra.mxu2 %vm966_vm3, %v2226_v60  ;;  %1734 = vmatmul.msk.f32.gmra.mxu3 %vm966_vm3, %v2226_v60 }
  0xed   : > { %861 = vst [vmem:[%s2210_s18 + $0x38] sm:$0xff] %v797_v4 }
  0xee   : > { %866 = vst [vmem:[%s2210_s18 + $0x60] sm:$0xff] %v802_v5 }
  0xef   : > { %867 = vst [vmem:[%s2210_s18 + $0x68] sm:$0xff] %v803_v6  ;;  %v728_v41 = vpop.f32.mrf.mxu2  ;;  %v769_v8 = vpop.f32.mrf.mxu3 }
  0xf0   : > { %v729_v9 = vadd.f32 %v728_v41, %v2219_v53  ;;  %v770_v10 = vadd.f32 %v769_v8, %v2219_v53  ;;  %v649_v11 = vpop.f32.mrf.mxu0  ;;  %v690_v12 = vpop.f32.mrf.mxu1 }
  0xf1   : > { %v650_v14 = vadd.f32 %v649_v11, %v2239_v3  ;;  %v691_v16 = vadd.f32 %v690_v12, %v2239_v3 }
  0xf2   : > { %v804_v60 = vmax.f32 %v729_v9, 0.0  ;;  %v805_v17 = vmax.f32 %v770_v10, 0.0 }
  0xf3   : > { %v810_v18 = vmax.f32 %v650_v14, 0.0  ;;  %v811_v19 = vmax.f32 %v691_v16, 0.0  ;;  %1708 = vmatmul.msk.f32.gmra.mxu0 %vm966_vm3, %v2254_v13  ;;  %1717 = vmatmul.msk.f32.gmra.mxu1 %vm966_vm3, %v2254_v13 }
  0xf4   : > { %868 = vst [vmem:[%s2210_s18 + $0x70] sm:$0xff] %v804_v60  ;;  %1726 = vmatmul.msk.f32.gmra.mxu2 %vm966_vm3, %v2254_v13  ;;  %1735 = vmatmul.msk.f32.gmra.mxu3 %vm966_vm3, %v2254_v13 }
  0xf5   : > { %869 = vst [vmem:[%s2210_s18 + $0x78] sm:$0xff] %v805_v17 }
  0xf6   : > { %874 = vst [vmem:[%s2210_s18 + $0xa0] sm:$0xff] %v810_v18 }
  0xf7   : > { %875 = vst [vmem:[%s2210_s18 + $0xa8] sm:$0xff] %v811_v19  ;;  %v731_v53 = vpop.f32.mrf.mxu2  ;;  %v772_v20 = vpop.f32.mrf.mxu3 }
  0xf8   : > { %v732_v22 = vadd.f32 %v731_v53, %v2239_v3  ;;  %v773_v24 = vadd.f32 %v772_v20, %v2239_v3  ;;  %v652_v25 = vpop.f32.mrf.mxu0  ;;  %v693_v26 = vpop.f32.mrf.mxu1 }
  0xf9   : > { %v653_v27 = vadd.f32 %v652_v25, %v2272_v21  ;;  %v694_v29 = vadd.f32 %v693_v26, %v2272_v21 }
  0xfa   : > { %v812_v13 = vmax.f32 %v732_v22, 0.0  ;;  %v813_v30 = vmax.f32 %v773_v24, 0.0 }
  0xfb   : > { %v818_v32 = vmax.f32 %v653_v27, 0.0  ;;  %v819_v33 = vmax.f32 %v694_v29, 0.0  ;;  %1709 = vmatmul.msk.f32.gmra.mxu0 %vm966_vm3, %v2280_v28  ;;  %1718 = vmatmul.msk.f32.gmra.mxu1 %vm966_vm3, %v2280_v28 }
  0xfc   : > { %876 = vst [vmem:[%s2210_s18 + $0xb0] sm:$0xff] %v812_v13  ;;  %1727 = vmatmul.msk.f32.gmra.mxu2 %vm966_vm3, %v2280_v28  ;;  %1736 = vmatmul.msk.f32.gmra.mxu3 %vm966_vm3, %v2280_v28 }
  0xfd   : > { %877 = vst [vmem:[%s2210_s18 + $0xb8] sm:$0xff] %v813_v30 }
  0xfe   : > { %882 = vst [vmem:[%s2210_s18 + $0xe0] sm:$0xff] %v818_v32  ;;  %v2537_v32 = vpop.permute.xlu0 %933 }
  0xff   : > { %883 = vst [vmem:[%s2210_s18 + $0xe8] sm:$0xff] %v819_v33  ;;  %v734_v3 = vpop.f32.mrf.mxu2  ;;  %v775_v34 = vpop.f32.mrf.mxu3 }
 0x100   : > { %v735_v36 = vadd.f32 %v734_v3, %v2272_v21  ;;  %v776_v37 = vadd.f32 %v775_v34, %v2272_v21  ;;  %v655_v38 = vpop.f32.mrf.mxu0  ;;  %v696_v39 = vpop.f32.mrf.mxu1 }
 0x101   : > { %v656_v40 = vadd.f32 %v655_v38, %v2293_v35  ;;  %v697_v42 = vadd.f32 %v696_v39, %v2293_v35 }
 0x102   : > { %v820_v28 = vmax.f32 %v735_v36, 0.0  ;;  %v821_v43 = vmax.f32 %v776_v37, 0.0 }
 0x103   : > { %v826_v46 = vmax.f32 %v656_v40, 0.0  ;;  %v827_v47 = vmax.f32 %v697_v42, 0.0  ;;  %1710 = vmatmul.msk.f32.gmra.mxu0 %vm966_vm3, %v2306_v44  ;;  %1719 = vmatmul.msk.f32.gmra.mxu1 %vm966_vm3, %v2306_v44 }
 0x104   : > { %884 = vst [vmem:[%s2210_s18 + $0xf0] sm:$0xff] %v820_v28  ;;  %1728 = vmatmul.msk.f32.gmra.mxu2 %vm966_vm3, %v2306_v44  ;;  %1737 = vmatmul.msk.f32.gmra.mxu3 %vm966_vm3, %v2306_v44 }
 0x105   : > { %885 = vst [vmem:[%s2210_s18 + $0xf8] sm:$0xff] %v821_v43 }
 0x106   : > { %890 = vst [vmem:[%s2210_s18 + $0x120] sm:$0xff] %v826_v46  ;;  %v2547_v46 = vpop.permute.xlu1 %938 }
 0x107   : > { %891 = vst [vmem:[%s2210_s18 + $0x128] sm:$0xff] %v827_v47  ;;  %v737_v21 = vpop.f32.mrf.mxu2  ;;  %v778_v48 = vpop.f32.mrf.mxu3 }
 0x108   : > { %v738_v49 = vadd.f32 %v737_v21, %v2293_v35  ;;  %v779_v50 = vadd.f32 %v778_v48, %v2293_v35  ;;  %v658_v51 = vpop.f32.mrf.mxu0  ;;  %v699_v52 = vpop.f32.mrf.mxu1 }
 0x109   : > { %v659_v55 = vadd.f32 %v658_v51, %v2324_v54  ;;  %v700_v56 = vadd.f32 %v699_v52, %v2324_v54 }
 0x10a   : > { %v828_v44 = vmax.f32 %v738_v49, 0.0  ;;  %v829_v57 = vmax.f32 %v779_v50, 0.0 }
 0x10b   : > { %v834_v58 = vmax.f32 %v659_v55, 0.0  ;;  %v835_v59 = vmax.f32 %v700_v56, 0.0  ;;  %1711 = vmatmul.msk.f32.gmra.mxu0 %vm966_vm3, %v2332_v62  ;;  %1720 = vmatmul.msk.f32.gmra.mxu1 %vm966_vm3, %v2332_v62 }
 0x10c   : > { %892 = vst [vmem:[%s2210_s18 + $0x130] sm:$0xff] %v828_v44  ;;  %1729 = vmatmul.msk.f32.gmra.mxu2 %vm966_vm3, %v2332_v62  ;;  %1738 = vmatmul.msk.f32.gmra.mxu3 %vm966_vm3, %v2332_v62 }
 0x10d   : > { %893 = vst [vmem:[%s2210_s18 + $0x138] sm:$0xff] %v829_v57 }
 0x10e   : > { %898 = vst [vmem:[%s2210_s18 + $0x160] sm:$0xff] %v834_v58 }
 0x10f   : > { %899 = vst [vmem:[%s2210_s18 + $0x168] sm:$0xff] %v835_v59  ;;  %v740_v35 = vpop.f32.mrf.mxu2  ;;  %v781_v61 = vpop.f32.mrf.mxu3 }
 0x110   : > { %v741_v63 = vadd.f32 %v740_v35, %v2324_v54  ;;  %v782_v0 = vadd.f32 %v781_v61, %v2324_v54  ;;  %v661_v1 = vpop.f32.mrf.mxu0  ;;  %v702_v2 = vpop.f32.mrf.mxu1 }
 0x111   : > { %v662_v45 = vadd.f32 %v661_v1, %v2350_v7  ;;  %v703_v4 = vadd.f32 %v702_v2, %v2350_v7 }
 0x112   : > { %v836_v62 = vmax.f32 %v741_v63, 0.0  ;;  %v837_v5 = vmax.f32 %v782_v0, 0.0 }
 0x113   : > { %v842_v6 = vmax.f32 %v662_v45, 0.0  ;;  %v843_v41 = vmax.f32 %v703_v4, 0.0  ;;  %1712 = vmatmul.msk.f32.gmra.mxu0 %vm966_vm3, %v2358_v15  ;;  %1721 = vmatmul.msk.f32.gmra.mxu1 %vm966_vm3, %v2358_v15 }
 0x114   : > { %900 = vst [vmem:[%s2210_s18 + $0x170] sm:$0xff] %v836_v62  ;;  %1730 = vmatmul.msk.f32.gmra.mxu2 %vm966_vm3, %v2358_v15  ;;  %1739 = vmatmul.msk.f32.gmra.mxu3 %vm966_vm3, %v2358_v15 }
 0x115   : > { %901 = vst [vmem:[%s2210_s18 + $0x178] sm:$0xff] %v837_v5 }
 0x116   : > { %906 = vst [vmem:[%s2210_s18 + $0x1a0] sm:$0xff] %v842_v6 }
 0x117   : > { %907 = vst [vmem:[%s2210_s18 + $0x1a8] sm:$0xff] %v843_v41  ;;  %v743_v54 = vpop.f32.mrf.mxu2  ;;  %v784_v8 = vpop.f32.mrf.mxu3 }
 0x118   : > { %v744_v9 = vadd.f32 %v743_v54, %v2350_v7  ;;  %v785_v10 = vadd.f32 %v784_v8, %v2350_v7  ;;  %v664_v11 = vpop.f32.mrf.mxu0  ;;  %v705_v12 = vpop.f32.mrf.mxu1 }
 0x119   : > { %v665_v14 = vadd.f32 %v664_v11, %v2373_v23  ;;  %v706_v16 = vadd.f32 %v705_v12, %v2373_v23  ;;  %v2527_v7 = vpop.permute.xlu2 %928  ;;  %v2567_v54 = vpop.permute.xlu0 %948 }
 0x11a   : > { %v844_v15 = vmax.f32 %v744_v9, 0.0  ;;  %v845_v60 = vmax.f32 %v785_v10, 0.0 }
 0x11b   : > { %v850_v17 = vmax.f32 %v665_v14, 0.0  ;;  %v851_v18 = vmax.f32 %v706_v16, 0.0  ;;  %1713 = vmatmul.msk.f32.gmra.mxu0 %vm966_vm3, %v2381_v31  ;;  %1722 = vmatmul.msk.f32.gmra.mxu1 %vm966_vm3, %v2381_v31 }
 0x11c   : > { %908 = vst [vmem:[%s2210_s18 + $0x1b0] sm:$0xff] %v844_v15  ;;  %1731 = vmatmul.msk.f32.gmra.mxu2 %vm966_vm3, %v2381_v31  ;;  %1740 = vmatmul.msk.f32.gmra.mxu3 %vm966_vm3, %v2381_v31 }
 0x11d   : > { %909 = vst [vmem:[%s2210_s18 + $0x1b8] sm:$0xff] %v845_v60 }
 0x11e   : > { %914 = vst [vmem:[%s2210_s18 + $0x1e0] sm:$0xff] %v850_v17 }
 0x11f   : > { %915 = vst [vmem:[%s2210_s18 + $0x1e8] sm:$0xff] %v851_v18  ;;  %v746_v19 = vpop.f32.mrf.mxu2  ;;  %v787_v53 = vpop.f32.mrf.mxu3 }
 0x120   : > { %v747_v20 = vadd.f32 %v746_v19, %v2373_v23  ;;  %v788_v22 = vadd.f32 %v787_v53, %v2373_v23  ;;  %v1033_v24 = vpop.f32.mrf.mxu0  ;;  %v1074_v25 = vpop.f32.mrf.mxu1 }
 0x121   : > { %v1034_v26 = vadd.f32 %v1033_v24, %v2527_v7  ;;  %v1075_v31 = vadd.f32 %v1074_v25, %v2527_v7  ;;  %v2557_v59 = vpop.permute.xlu2 %943  ;;  %v2577_v53 = vpop.permute.xlu1 %953 }
 0x122   : > { %v852_v27 = vmax.f32 %v747_v20, 0.0  ;;  %v853_v29 = vmax.f32 %v788_v22, 0.0 }
 0x123   : > { %v1344_v13 = vmax.f32 %v1034_v26, 0.0  ;;  %v1345_v30 = vmax.f32 %v1075_v31, 0.0 }
 0x124   : > { %916 = vst [vmem:[%s2210_s18 + $0x1f0] sm:$0xff] %v852_v27 }
 0x125   : > { %917 = vst [vmem:[%s2210_s18 + $0x1f8] sm:$0xff] %v853_v29 }
 0x126   : > { %1408 = vst [vmem:[%s2210_s18 + $0x200] sm:$0xff] %v1344_v13 }
 0x127   : > { %1409 = vst [vmem:[%s2210_s18 + $0x208] sm:$0xff] %v1345_v30  ;;  %v1115_v23 = vpop.f32.mrf.mxu2  ;;  %v1156_v33 = vpop.f32.mrf.mxu3 }
 0x128   : > { %v1116_v3 = vadd.f32 %v1115_v23, %v2527_v7  ;;  %v1157_v34 = vadd.f32 %v1156_v33, %v2527_v7  ;;  %v1036_v36 = vpop.f32.mrf.mxu0  ;;  %v1077_v37 = vpop.f32.mrf.mxu1 }
 0x129   : > { %v1037_v38 = vadd.f32 %v1036_v36, %v2537_v32  ;;  %v1078_v39 = vadd.f32 %v1077_v37, %v2537_v32 }
 0x12a   : > { %v1346_v40 = vmax.f32 %v1116_v3, 0.0  ;;  %v1347_v42 = vmax.f32 %v1157_v34, 0.0  ;;  %v2587_v3 = vpop.permute.xlu2 %958 }
 0x12b   : > { %v1352_v28 = vmax.f32 %v1037_v38, 0.0  ;;  %v1353_v43 = vmax.f32 %v1078_v39, 0.0 }
 0x12c   : > { %1410 = vst [vmem:[%s2210_s18 + $0x210] sm:$0xff] %v1346_v40 }
 0x12d   : > { %1411 = vst [vmem:[%s2210_s18 + $0x218] sm:$0xff] %v1347_v42 }
 0x12e   : > { %1416 = vst [vmem:[%s2210_s18 + $0x240] sm:$0xff] %v1352_v28 }
 0x12f   : > { %1417 = vst [vmem:[%s2210_s18 + $0x248] sm:$0xff] %v1353_v43  ;;  %v1118_v47 = vpop.f32.mrf.mxu2  ;;  %v1159_v21 = vpop.f32.mrf.mxu3 }
 0x130   : > { %v1119_v48 = vadd.f32 %v1118_v47, %v2537_v32  ;;  %v1160_v49 = vadd.f32 %v1159_v21, %v2537_v32  ;;  %v1039_v50 = vpop.f32.mrf.mxu0  ;;  %v1080_v51 = vpop.f32.mrf.mxu1 }
 0x131   : > { %v1040_v52 = vadd.f32 %v1039_v50, %v2547_v46  ;;  %v1081_v55 = vadd.f32 %v1080_v51, %v2547_v46 }
 0x132   : > { %v1354_v56 = vmax.f32 %v1119_v48, 0.0  ;;  %v1355_v44 = vmax.f32 %v1160_v49, 0.0  ;;  %v2597_v49 = vpop.permute.xlu0 %963 }
 0x133   : > { %v1360_v57 = vmax.f32 %v1040_v52, 0.0  ;;  %v1361_v58 = vmax.f32 %v1081_v55, 0.0 }
 0x134   : > { %1418 = vst [vmem:[%s2210_s18 + $0x250] sm:$0xff] %v1354_v56 }
 0x135   : > { %1419 = vst [vmem:[%s2210_s18 + $0x258] sm:$0xff] %v1355_v44 }
 0x136   : > { %1424 = vst [vmem:[%s2210_s18 + $0x280] sm:$0xff] %v1360_v57 }
 0x137   : > { %1425 = vst [vmem:[%s2210_s18 + $0x288] sm:$0xff] %v1361_v58  ;;  %v1121_v35 = vpop.f32.mrf.mxu2  ;;  %v1162_v61 = vpop.f32.mrf.mxu3 }
 0x138   : > { %v1122_v63 = vadd.f32 %v1121_v35, %v2547_v46  ;;  %v1163_v0 = vadd.f32 %v1162_v61, %v2547_v46  ;;  %v1042_v1 = vpop.f32.mrf.mxu0  ;;  %v1083_v2 = vpop.f32.mrf.mxu1 }
 0x139   : > { %v1043_v45 = vadd.f32 %v1042_v1, %v2557_v59  ;;  %v1084_v4 = vadd.f32 %v1083_v2, %v2557_v59 }
 0x13a   : > { %v1362_v62 = vmax.f32 %v1122_v63, 0.0  ;;  %v1363_v5 = vmax.f32 %v1163_v0, 0.0 }
 0x13b   : > { %v1368_v6 = vmax.f32 %v1043_v45, 0.0  ;;  %v1369_v41 = vmax.f32 %v1084_v4, 0.0 }
 0x13c   : > { %1426 = vst [vmem:[%s2210_s18 + $0x290] sm:$0xff] %v1362_v62 }
 0x13d   : > { %1427 = vst [vmem:[%s2210_s18 + $0x298] sm:$0xff] %v1363_v5 }
 0x13e   : > { %1432 = vst [vmem:[%s2210_s18 + $0x2c0] sm:$0xff] %v1368_v6 }
 0x13f   : > { %1433 = vst [vmem:[%s2210_s18 + $0x2c8] sm:$0xff] %v1369_v41  ;;  %v1124_v8 = vpop.f32.mrf.mxu2  ;;  %v1165_v9 = vpop.f32.mrf.mxu3 }
 0x140   : > { %v1125_v10 = vadd.f32 %v1124_v8, %v2557_v59  ;;  %v1166_v11 = vadd.f32 %v1165_v9, %v2557_v59  ;;  %v1045_v12 = vpop.f32.mrf.mxu0  ;;  %v1086_v14 = vpop.f32.mrf.mxu1 }
 0x141   : > { %v1046_v16 = vadd.f32 %v1045_v12, %v2567_v54  ;;  %v1087_v15 = vadd.f32 %v1086_v14, %v2567_v54 }
 0x142   : > { %v1370_v60 = vmax.f32 %v1125_v10, 0.0  ;;  %v1371_v17 = vmax.f32 %v1166_v11, 0.0 }
 0x143   : > { %v1376_v18 = vmax.f32 %v1046_v16, 0.0  ;;  %v1377_v19 = vmax.f32 %v1087_v15, 0.0 }
 0x144   : > { %1434 = vst [vmem:[%s2210_s18 + $0x2d0] sm:$0xff] %v1370_v60 }
 0x145   : > { %1435 = vst [vmem:[%s2210_s18 + $0x2d8] sm:$0xff] %v1371_v17 }
 0x146   : > { %1440 = vst [vmem:[%s2210_s18 + $0x300] sm:$0xff] %v1376_v18 }
 0x147   : > { %1441 = vst [vmem:[%s2210_s18 + $0x308] sm:$0xff] %v1377_v19  ;;  %v1127_v20 = vpop.f32.mrf.mxu2  ;;  %v1168_v22 = vpop.f32.mrf.mxu3 }
 0x148   : > { %v1128_v24 = vadd.f32 %v1127_v20, %v2567_v54  ;;  %v1169_v25 = vadd.f32 %v1168_v22, %v2567_v54  ;;  %v1048_v26 = vpop.f32.mrf.mxu0  ;;  %v1089_v31 = vpop.f32.mrf.mxu1 }
 0x149   : > { %v1049_v27 = vadd.f32 %v1048_v26, %v2577_v53  ;;  %v1090_v29 = vadd.f32 %v1089_v31, %v2577_v53 }
 0x14a   : > { %v1378_v13 = vmax.f32 %v1128_v24, 0.0  ;;  %v1379_v30 = vmax.f32 %v1169_v25, 0.0 }
 0x14b   : > { %v1384_v23 = vmax.f32 %v1049_v27, 0.0  ;;  %v1385_v33 = vmax.f32 %v1090_v29, 0.0 }
 0x14c   : > { %1442 = vst [vmem:[%s2210_s18 + $0x310] sm:$0xff] %v1378_v13 }
 0x14d   : > { %1443 = vst [vmem:[%s2210_s18 + $0x318] sm:$0xff] %v1379_v30 }
 0x14e   : > { %1448 = vst [vmem:[%s2210_s18 + $0x340] sm:$0xff] %v1384_v23 }
 0x14f   : > { %1449 = vst [vmem:[%s2210_s18 + $0x348] sm:$0xff] %v1385_v33  ;;  %v1130_v34 = vpop.f32.mrf.mxu2  ;;  %v1171_v36 = vpop.f32.mrf.mxu3 }
 0x150   : > { %v1131_v37 = vadd.f32 %v1130_v34, %v2577_v53  ;;  %v1172_v38 = vadd.f32 %v1171_v36, %v2577_v53  ;;  %v1051_v39 = vpop.f32.mrf.mxu0  ;;  %v1092_v40 = vpop.f32.mrf.mxu1 }
 0x151   : > { %v1052_v42 = vadd.f32 %v1051_v39, %v2587_v3  ;;  %v1093_v28 = vadd.f32 %v1092_v40, %v2587_v3 }
 0x152   : > { %v1386_v43 = vmax.f32 %v1131_v37, 0.0  ;;  %v1387_v47 = vmax.f32 %v1172_v38, 0.0 }
 0x153   : > { %v1392_v21 = vmax.f32 %v1052_v42, 0.0  ;;  %v1393_v48 = vmax.f32 %v1093_v28, 0.0 }
 0x154   : > { %1450 = vst [vmem:[%s2210_s18 + $0x350] sm:$0xff] %v1386_v43 }
 0x155   : > { %1451 = vst [vmem:[%s2210_s18 + $0x358] sm:$0xff] %v1387_v47 }
 0x156   : > { %1456 = vst [vmem:[%s2210_s18 + $0x380] sm:$0xff] %v1392_v21 }
 0x157   : > { %1457 = vst [vmem:[%s2210_s18 + $0x388] sm:$0xff] %v1393_v48  ;;  %v1133_v50 = vpop.f32.mrf.mxu2  ;;  %v1174_v51 = vpop.f32.mrf.mxu3 }
 0x158   : > { %v1134_v52 = vadd.f32 %v1133_v50, %v2587_v3  ;;  %v1175_v55 = vadd.f32 %v1174_v51, %v2587_v3  ;;  %v1054_v56 = vpop.f32.mrf.mxu0  ;;  %v1095_v44 = vpop.f32.mrf.mxu1 }
 0x159   : > { %v1055_v57 = vadd.f32 %v1054_v56, %v2597_v49  ;;  %v1096_v58 = vadd.f32 %v1095_v44, %v2597_v49 }
 0x15a   : > { %v1394_v35 = vmax.f32 %v1134_v52, 0.0  ;;  %v1395_v61 = vmax.f32 %v1175_v55, 0.0 }
 0x15b   : > { %v1400_v63 = vmax.f32 %v1055_v57, 0.0  ;;  %v1401_v0 = vmax.f32 %v1096_v58, 0.0 }
 0x15c   : > { %1458 = vst [vmem:[%s2210_s18 + $0x390] sm:$0xff] %v1394_v35 }
 0x15d   : > { %1459 = vst [vmem:[%s2210_s18 + $0x398] sm:$0xff] %v1395_v61 }
 0x15e   : > { %1464 = vst [vmem:[%s2210_s18 + $0x3c0] sm:$0xff] %v1400_v63 }
 0x15f   : > { %1465 = vst [vmem:[%s2210_s18 + $0x3c8] sm:$0xff] %v1401_v0  ;;  %v1136_v1 = vpop.f32.mrf.mxu2  ;;  %v1177_v2 = vpop.f32.mrf.mxu3 }
 0x160   : > { %v1137_v45 = vadd.f32 %v1136_v1, %v2597_v49  ;;  %v1178_v4 = vadd.f32 %v1177_v2, %v2597_v49  ;;  %v1197_v62 = vpop.f32.mrf.mxu0  ;;  %v1238_v5 = vpop.f32.mrf.mxu1 }
 0x161   : > { %v1198_v6 = vadd.f32 %v1197_v62, %v2527_v7  ;;  %v1239_v41 = vadd.f32 %v1238_v5, %v2527_v7 }
 0x162   : > { %v1402_v8 = vmax.f32 %v1137_v45, 0.0  ;;  %v1403_v9 = vmax.f32 %v1178_v4, 0.0 }
 0x163   : > { %v1348_v10 = vmax.f32 %v1198_v6, 0.0  ;;  %v1349_v11 = vmax.f32 %v1239_v41, 0.0 }
 0x164   : > { %1466 = vst [vmem:[%s2210_s18 + $0x3d0] sm:$0xff] %v1402_v8 }
 0x165   : > { %1467 = vst [vmem:[%s2210_s18 + $0x3d8] sm:$0xff] %v1403_v9 }
 0x166   : > { %1412 = vst [vmem:[%s2210_s18 + $0x220] sm:$0xff] %v1348_v10 }
 0x167   : > { %1413 = vst [vmem:[%s2210_s18 + $0x228] sm:$0xff] %v1349_v11  ;;  %v1279_v12 = vpop.f32.mrf.mxu2  ;;  %v1320_v14 = vpop.f32.mrf.mxu3 }
 0x168   : > { %v1280_v16 = vadd.f32 %v1279_v12, %v2527_v7  ;;  %v1321_v15 = vadd.f32 %v1320_v14, %v2527_v7  ;;  %v1200_v60 = vpop.f32.mrf.mxu0  ;;  %v1241_v17 = vpop.f32.mrf.mxu1 }
 0x169   : > { %v1201_v18 = vadd.f32 %v1200_v60, %v2537_v32  ;;  %v1242_v19 = vadd.f32 %v1241_v17, %v2537_v32 }
 0x16a   : > { %v1350_v20 = vmax.f32 %v1280_v16, 0.0  ;;  %v1351_v22 = vmax.f32 %v1321_v15, 0.0 }
 0x16b   : > { %v1356_v24 = vmax.f32 %v1201_v18, 0.0  ;;  %v1357_v25 = vmax.f32 %v1242_v19, 0.0 }
 0x16c   : > { %1414 = vst [vmem:[%s2210_s18 + $0x230] sm:$0xff] %v1350_v20 }
 0x16d   : > { %1415 = vst [vmem:[%s2210_s18 + $0x238] sm:$0xff] %v1351_v22 }
 0x16e   : > { %1420 = vst [vmem:[%s2210_s18 + $0x260] sm:$0xff] %v1356_v24 }
 0x16f   : > { %1421 = vst [vmem:[%s2210_s18 + $0x268] sm:$0xff] %v1357_v25  ;;  %v1282_v26 = vpop.f32.mrf.mxu2  ;;  %v1323_v7 = vpop.f32.mrf.mxu3 }
 0x170   : > { %v1283_v31 = vadd.f32 %v1282_v26, %v2537_v32  ;;  %v1324_v27 = vadd.f32 %v1323_v7, %v2537_v32  ;;  %v1203_v29 = vpop.f32.mrf.mxu0  ;;  %v1244_v13 = vpop.f32.mrf.mxu1 }
 0x171   : > { %v1204_v30 = vadd.f32 %v1203_v29, %v2547_v46  ;;  %v1245_v23 = vadd.f32 %v1244_v13, %v2547_v46 }
 0x172   : > { %v1358_v33 = vmax.f32 %v1283_v31, 0.0  ;;  %v1359_v34 = vmax.f32 %v1324_v27, 0.0 }
 0x173   : > { %v1364_v36 = vmax.f32 %v1204_v30, 0.0  ;;  %v1365_v37 = vmax.f32 %v1245_v23, 0.0 }
 0x174   : > { %1422 = vst [vmem:[%s2210_s18 + $0x270] sm:$0xff] %v1358_v33 }
 0x175   : > { %1423 = vst [vmem:[%s2210_s18 + $0x278] sm:$0xff] %v1359_v34 }
 0x176   : > { %1428 = vst [vmem:[%s2210_s18 + $0x2a0] sm:$0xff] %v1364_v36 }
 0x177   : > { %1429 = vst [vmem:[%s2210_s18 + $0x2a8] sm:$0xff] %v1365_v37  ;;  %v1285_v38 = vpop.f32.mrf.mxu2  ;;  %v1326_v32 = vpop.f32.mrf.mxu3 }
 0x178   : > { %v1286_v39 = vadd.f32 %v1285_v38, %v2547_v46  ;;  %v1327_v40 = vadd.f32 %v1326_v32, %v2547_v46  ;;  %v1206_v42 = vpop.f32.mrf.mxu0  ;;  %v1247_v28 = vpop.f32.mrf.mxu1 }
 0x179   : > { %v1207_v43 = vadd.f32 %v1206_v42, %v2557_v59  ;;  %v1248_v47 = vadd.f32 %v1247_v28, %v2557_v59 }
 0x17a   : > { %v1366_v21 = vmax.f32 %v1286_v39, 0.0  ;;  %v1367_v48 = vmax.f32 %v1327_v40, 0.0 }
 0x17b   : > { %v1372_v50 = vmax.f32 %v1207_v43, 0.0  ;;  %v1373_v51 = vmax.f32 %v1248_v47, 0.0 }
 0x17c   : > { %1430 = vst [vmem:[%s2210_s18 + $0x2b0] sm:$0xff] %v1366_v21 }
 0x17d   : > { %1431 = vst [vmem:[%s2210_s18 + $0x2b8] sm:$0xff] %v1367_v48 }
 0x17e   : > { %1436 = vst [vmem:[%s2210_s18 + $0x2e0] sm:$0xff] %v1372_v50 }
 0x17f   : > { %1437 = vst [vmem:[%s2210_s18 + $0x2e8] sm:$0xff] %v1373_v51  ;;  %v1288_v52 = vpop.f32.mrf.mxu2  ;;  %v1329_v46 = vpop.f32.mrf.mxu3 }
 0x180   : > { %v1289_v55 = vadd.f32 %v1288_v52, %v2557_v59  ;;  %v1330_v56 = vadd.f32 %v1329_v46, %v2557_v59  ;;  %v1209_v44 = vpop.f32.mrf.mxu0  ;;  %v1250_v57 = vpop.f32.mrf.mxu1 }
 0x181   : > { %v1210_v58 = vadd.f32 %v1209_v44, %v2567_v54  ;;  %v1251_v35 = vadd.f32 %v1250_v57, %v2567_v54 }
 0x182   : > { %v1374_v61 = vmax.f32 %v1289_v55, 0.0  ;;  %v1375_v63 = vmax.f32 %v1330_v56, 0.0 }
 0x183   : > { %v1380_v0 = vmax.f32 %v1210_v58, 0.0  ;;  %v1381_v1 = vmax.f32 %v1251_v35, 0.0 }
 0x184   : > { %1438 = vst [vmem:[%s2210_s18 + $0x2f0] sm:$0xff] %v1374_v61 }
 0x185   : > { %1439 = vst [vmem:[%s2210_s18 + $0x2f8] sm:$0xff] %v1375_v63 }
 0x186   : > { %1444 = vst [vmem:[%s2210_s18 + $0x320] sm:$0xff] %v1380_v0 }
 0x187   : > { %1445 = vst [vmem:[%s2210_s18 + $0x328] sm:$0xff] %v1381_v1  ;;  %v1291_v2 = vpop.f32.mrf.mxu2  ;;  %v1332_v59 = vpop.f32.mrf.mxu3 }
 0x188   : > { %v1292_v45 = vadd.f32 %v1291_v2, %v2567_v54  ;;  %v1333_v4 = vadd.f32 %v1332_v59, %v2567_v54  ;;  %v1212_v62 = vpop.f32.mrf.mxu0  ;;  %v1253_v5 = vpop.f32.mrf.mxu1 }
 0x189   : > { %v1213_v6 = vadd.f32 %v1212_v62, %v2577_v53  ;;  %v1254_v41 = vadd.f32 %v1253_v5, %v2577_v53 }
 0x18a   : > { %v1382_v8 = vmax.f32 %v1292_v45, 0.0  ;;  %v1383_v9 = vmax.f32 %v1333_v4, 0.0 }
 0x18b   : > { %v1388_v10 = vmax.f32 %v1213_v6, 0.0  ;;  %v1389_v11 = vmax.f32 %v1254_v41, 0.0 }
 0x18c   : > { %1446 = vst [vmem:[%s2210_s18 + $0x330] sm:$0xff] %v1382_v8 }
 0x18d   : > { %1447 = vst [vmem:[%s2210_s18 + $0x338] sm:$0xff] %v1383_v9 }
 0x18e   : > { %1452 = vst [vmem:[%s2210_s18 + $0x360] sm:$0xff] %v1388_v10 }
 0x18f   : > { %1453 = vst [vmem:[%s2210_s18 + $0x368] sm:$0xff] %v1389_v11  ;;  %v1294_v12 = vpop.f32.mrf.mxu2  ;;  %v1335_v54 = vpop.f32.mrf.mxu3 }
 0x190   : > { %v1295_v14 = vadd.f32 %v1294_v12, %v2577_v53  ;;  %v1336_v16 = vadd.f32 %v1335_v54, %v2577_v53  ;;  %v1215_v15 = vpop.f32.mrf.mxu0  ;;  %v1256_v60 = vpop.f32.mrf.mxu1 }
 0x191   : > { %v1216_v17 = vadd.f32 %v1215_v15, %v2587_v3  ;;  %v1257_v18 = vadd.f32 %v1256_v60, %v2587_v3 }
 0x192   : > { %v1390_v19 = vmax.f32 %v1295_v14, 0.0  ;;  %v1391_v20 = vmax.f32 %v1336_v16, 0.0 }
 0x193   : > { %v1396_v22 = vmax.f32 %v1216_v17, 0.0  ;;  %v1397_v24 = vmax.f32 %v1257_v18, 0.0 }
 0x194   : > { %1454 = vst [vmem:[%s2210_s18 + $0x370] sm:$0xff] %v1390_v19 }
 0x195   : > { %1455 = vst [vmem:[%s2210_s18 + $0x378] sm:$0xff] %v1391_v20 }
 0x196   : > { %1460 = vst [vmem:[%s2210_s18 + $0x3a0] sm:$0xff] %v1396_v22 }
 0x197   : > { %1461 = vst [vmem:[%s2210_s18 + $0x3a8] sm:$0xff] %v1397_v24  ;;  %v1297_v25 = vpop.f32.mrf.mxu2  ;;  %v1338_v53 = vpop.f32.mrf.mxu3 }
 0x198   : > { %v1298_v26 = vadd.f32 %v1297_v25, %v2587_v3  ;;  %v1339_v7 = vadd.f32 %v1338_v53, %v2587_v3  ;;  %v1218_v31 = vpop.f32.mrf.mxu0  ;;  %v1259_v27 = vpop.f32.mrf.mxu1 }
 0x199   : > { %v1219_v29 = vadd.f32 %v1218_v31, %v2597_v49  ;;  %v1260_v13 = vadd.f32 %v1259_v27, %v2597_v49 }
 0x19a   : > { %v1398_v30 = vmax.f32 %v1298_v26, 0.0  ;;  %v1399_v23 = vmax.f32 %v1339_v7, 0.0 }
 0x19b   : > { %v1404_v33 = vmax.f32 %v1219_v29, 0.0  ;;  %v1405_v34 = vmax.f32 %v1260_v13, 0.0 }
 0x19c   : > { %1462 = vst [vmem:[%s2210_s18 + $0x3b0] sm:$0xff] %v1398_v30 }
 0x19d   : > { %1463 = vst [vmem:[%s2210_s18 + $0x3b8] sm:$0xff] %v1399_v23 }
 0x19e   : > { %1468 = vst [vmem:[%s2210_s18 + $0x3e0] sm:$0xff] %v1404_v33 }
 0x19f   : > { %1469 = vst [vmem:[%s2210_s18 + $0x3e8] sm:$0xff] %v1405_v34  ;;  %v1300_v3 = vpop.f32.mrf.mxu2  ;;  %v1341_v36 = vpop.f32.mrf.mxu3 }
 0x1a0   : > { %v1301_v37 = vadd.f32 %v1300_v3, %v2597_v49  ;;  %v1342_v38 = vadd.f32 %v1341_v36, %v2597_v49 }
 0x1a2   : > { %v1406_v32 = vmax.f32 %v1301_v37, 0.0  ;;  %v1407_v39 = vmax.f32 %v1342_v38, 0.0 }
 0x1a4   : > { %1470 = vst [vmem:[%s2210_s18 + $0x3f0] sm:$0xff] %v1406_v32 }
 0x1a5   : > { %1471 = vst [vmem:[%s2210_s18 + $0x3f8] sm:$0xff] %v1407_v39 }
 0x1a6   : > { %1837 = shalt.err (!%p1834_p5)
}
 0x1a7   : > { %s1891_s12 = smov 1024   ;;  %s1892_s18 = smov 64  }
 0x1a8   : > { %1749 = dma.vmem_to_hbm [thread:$0]  (%p1968_p4), %s1488_s14, 16384, %s1490_s24, %s1473_s15, %s1891_s12, %s1891_s12, %s1892_s18  }
 0x1a9 PF: > { %p1755_p6 = scmp.ge.s32.totalorder %s1888_s26, 2  ;;  %s1504_s11 = sand.u32 1, %s1868_s21  }
 0x1aa   : > { %s1505_s8 = scalar_lea.sflag [#allocation3], %s1504_s11 }
 0x1ab   : > { %p1752_p7 = pnand %p1755_p6, %p1975_p8 }
 0x1ad   : > { %p1753_p9 = pneg %p1752_p7 }
 0x1af   : > { %1863 = dma.done.wait (%p1753_p9), %s1505_s8, 16384  }
 0x1b0   : > { %1865 = vsyncadd (%p1753_p9), %s1505_s8, 4294950912  ;;  %s19_s26 = sadd.s32 1, %s1888_s26   ;;  %s2724_s21 = smov %s1872_s22 }
 0x1b1   : > { %p16_p10 = scmp.ge.s32.totalorder %s19_s26, 4   ;;  %s2725_s22 = smov %s1876_s23 }
 0x1b2   : > { %s2726_s23 = smov %s1981_s10  ;;  %s2727_s24 = smov %s1884_s25 }
 0x1b3   : > { %s2728_s25 = smov %s2730_s29  ;;  %18 = sbr.rel (!%p16_p10) target bundleno = 4 (0x4), region = 85 }
 0x1b8   :  { %1511 = vsyncpa [#allocation3], 1 }
 0x1b9   :  { %1513 = vsyncpa [#allocation3 + $0x1], 1 }

</bundles_post_ra>
